<compile_context>
chip_gen: v7x
topology: tpu7x:2x2x1
jax: 0.10.0
libtpu: 0.0.40
codegen_flags: <defaults>
</compile_context>

<pallas_src>
import math

import jax
import jax.numpy as jnp
import numpy as np
from jax.experimental import pallas as pl
from jax.experimental.pallas import tpu as pltpu


def _variational_mlp_kernel(inp_ref, w1_ref, b1_ref,
                            wlv_ref, blv_ref, wmu_ref, bmu_ref, eps_ref,
                            z_ref, logvar_ref, mu_ref):
    # Upcast once inside the kernel (all math in f32; supports bf16 activations).
    x = inp_ref[...].astype(jnp.float32)

    h = jnp.dot(x, w1_ref[...].astype(jnp.float32),
                preferred_element_type=jnp.float32) + b1_ref[...].astype(jnp.float32)
    h = jnp.maximum(h, 0.0)                                    # ReLU activation

    logvar = (jnp.dot(h, wlv_ref[...].astype(jnp.float32),
                      preferred_element_type=jnp.float32)
              + blv_ref[...].astype(jnp.float32))
    mu = (jnp.dot(h, wmu_ref[...].astype(jnp.float32),
                  preferred_element_type=jnp.float32)
          + bmu_ref[...].astype(jnp.float32))

    sigma = jnp.exp(0.5 * logvar)        # == sqrt(exp(logvar)), one EUP op/elem
    z = sigma * eps_ref[...].astype(jnp.float32) + mu

    z_ref[...] = z.astype(z_ref.dtype)
    logvar_ref[...] = logvar.astype(logvar_ref.dtype)
    mu_ref[...] = mu.astype(mu_ref.dtype)


def variational_mlp(inputs, params, eps, *, block_rows=512):
    """Pallas forward pass. Returns (z, logvar, mu), each (N, Z)."""
    N, Din = inputs.shape
    H = params["w1"].shape[1]
    Z = params["w_mu"].shape[1]
    out_dtype = inputs.dtype

    # Batch tile: whole batch when small, else a multiple-of-8 tile (sublane rule).
    if N <= block_rows:
        tm, n_pad = N, N
    else:
        tm = block_rows                       # multiple of 8 by construction
        n_pad = ((N + tm - 1) // tm) * tm

    if n_pad != N:
        pad = ((0, n_pad - N), (0, 0))
        inputs_p = jnp.pad(inputs, pad)
        eps_p = jnp.pad(eps, pad)
    else:
        inputs_p, eps_p = inputs, eps

    grid = (n_pad // tm,)

    def row_spec(shape):                      # tiled over the batch axis
        return pl.BlockSpec(shape, lambda i: (i, 0))

    def full_spec(shape):                     # resident across all batch tiles
        return pl.BlockSpec(shape, lambda i: (0, 0))

    out_shapes = tuple(jax.ShapeDtypeStruct((n_pad, Z), out_dtype) for _ in range(3))
    out_specs = tuple(row_spec((tm, Z)) for _ in range(3))

    z, logvar, mu = pl.pallas_call(
        _variational_mlp_kernel,
        out_shape=out_shapes,
        grid=grid,
        in_specs=[
            row_spec((tm, Din)),              # inputs   : tiled over batch
            full_spec((Din, H)),              # W1       : resident weights
            full_spec((1, H)),                # b1
            full_spec((H, Z)),                # W_logvar
            full_spec((1, Z)),                # b_logvar
            full_spec((H, Z)),                # W_mu
            full_spec((1, Z)),                # b_mu
            row_spec((tm, Z)),                # eps      : tiled over batch
        ],
        out_specs=out_specs,
        compiler_params=pltpu.CompilerParams(
            dimension_semantics=("parallel",),        # megacore-shardable on v7x
            vmem_limit_bytes=32 * 1024 * 1024,        # safe on v5e/v6e/v7x
        ),
    )(inputs_p, params["w1"], params["b1"],
      params["w_logvar"], params["b_logvar"],
      params["w_mu"], params["b_mu"], eps_p)

    if n_pad != N:
        z, logvar, mu = z[:N], logvar[:N], mu[:N]
    return z, logvar, mu


def variational_mlp_ref(inputs, params, eps):
    """Pure-JAX reference mirroring the PyTorch module (activation = ReLU)."""
    h = jax.nn.relu(inputs @ params["w1"] + params["b1"])
    logvar = h @ params["w_logvar"] + params["b_logvar"]
    mu = h @ params["w_mu"] + params["b_mu"]
    sigma = jnp.sqrt(jnp.exp(logvar))
    z = sigma * eps + mu
    return z, logvar, mu


if __name__ == "__main__":
    in_features, hidden_dim, z_dim = 16, 32, 8

    key = jax.random.PRNGKey(0)
    ks = jax.random.split(key, 8)

    def init_linear(kw, kb, fan_in, fan_out):
        bound = 1.0 / math.sqrt(fan_in)
        w = jax.random.uniform(kw, (fan_in, fan_out), jnp.float32, -bound, bound)
        b = jax.random.uniform(kb, (1, fan_out), jnp.float32, -bound, bound)
        return w, b

    w1, b1 = init_linear(ks[0], ks[1], in_features, hidden_dim)
    wlv, blv = init_linear(ks[2], ks[3], hidden_dim, z_dim)
    wmu, bmu = init_linear(ks[4], ks[5], hidden_dim, z_dim)
    params = {"w1": w1, "b1": b1,
              "w_logvar": wlv, "b_logvar": blv,
              "w_mu": wmu, "b_mu": bmu}

    # small single-tile case + a multi-tile case exercising the batch grid/padding
    for n_batch, block_rows in ((8, 512), (300, 128)):
        x = jax.random.normal(ks[6], (n_batch, in_features), jnp.float32)
        # TODO(synk): torch.randn_like is replaced by an explicit `eps` input
        # (reparameterization semantics unchanged); pltpu.prng_* could generate
        # the noise on-chip if in-kernel sampling is required.
        eps = jax.random.normal(ks[7], (n_batch, z_dim), jnp.float32)

        z, logvar, mu = variational_mlp(x, params, eps, block_rows=block_rows)
        z = jax.block_until_ready(z)

        z_r, lv_r, mu_r = variational_mlp_ref(x, params, eps)
        np.testing.assert_allclose(np.asarray(z), np.asarray(z_r), rtol=1e-5, atol=1e-5)
        np.testing.assert_allclose(np.asarray(logvar), np.asarray(lv_r), rtol=1e-5, atol=1e-5)
        np.testing.assert_allclose(np.asarray(mu), np.asarray(mu_r), rtol=1e-5, atol=1e-5)

    print("KERNEL_OK")
</pallas_src>

<mosaic_0001>
module attributes {stable_mosaic.version = 11 : i64} {
  func.func @_variational_mlp_kernel(%arg0: i32, %arg1: memref<8x16xf32, #tpu.memory_space<vmem>>, %arg2: memref<16x32xf32, #tpu.memory_space<vmem>>, %arg3: memref<1x32xf32, #tpu.memory_space<vmem>>, %arg4: memref<32x8xf32, #tpu.memory_space<vmem>>, %arg5: memref<1x8xf32, #tpu.memory_space<vmem>>, %arg6: memref<32x8xf32, #tpu.memory_space<vmem>>, %arg7: memref<1x8xf32, #tpu.memory_space<vmem>>, %arg8: memref<8x8xf32, #tpu.memory_space<vmem>>, %arg9: memref<8x8xf32, #tpu.memory_space<vmem>>, %arg10: memref<8x8xf32, #tpu.memory_space<vmem>>, %arg11: memref<8x8xf32, #tpu.memory_space<vmem>>) attributes {dimension_semantics = [#tpu.dimension_semantics<parallel>], iteration_bounds = array<i64: 1>, scalar_prefetch = 0 : i64, scratch_operands = 0 : i64, tpu.core_type = #tpu.core_type<tc>, window_params = [{transform_indices = @transform_0, window_bounds = array<i64: 8, 16>}, {pipeline_mode = #tpu.pipeline_mode<synchronous>, transform_indices = @transform_1, window_bounds = array<i64: 16, 32>}, {pipeline_mode = #tpu.pipeline_mode<synchronous>, transform_indices = @transform_2, window_bounds = array<i64: 1, 32>}, {pipeline_mode = #tpu.pipeline_mode<synchronous>, transform_indices = @transform_3, window_bounds = array<i64: 32, 8>}, {pipeline_mode = #tpu.pipeline_mode<synchronous>, transform_indices = @transform_4, window_bounds = array<i64: 1, 8>}, {pipeline_mode = #tpu.pipeline_mode<synchronous>, transform_indices = @transform_5, window_bounds = array<i64: 32, 8>}, {pipeline_mode = #tpu.pipeline_mode<synchronous>, transform_indices = @transform_6, window_bounds = array<i64: 1, 8>}, {transform_indices = @transform_7, window_bounds = array<i64: 8, 8>}, {transform_indices = @transform_8, window_bounds = array<i64: 8, 8>}, {transform_indices = @transform_9, window_bounds = array<i64: 8, 8>}, {transform_indices = @transform_10, window_bounds = array<i64: 8, 8>}]} {
    %c0 = arith.constant 0 : index
    %c0_0 = arith.constant 0 : index
    %0 = vector.load %arg1[%c0, %c0_0] : memref<8x16xf32, #tpu.memory_space<vmem>>, vector<8x16xf32>
    %c0_1 = arith.constant 0 : index
    %c0_2 = arith.constant 0 : index
    %1 = vector.load %arg2[%c0_1, %c0_2] : memref<16x32xf32, #tpu.memory_space<vmem>>, vector<16x32xf32>
    %cst = arith.constant dense<0.000000e+00> : vector<8x32xf32>
    %2 = tpu.matmul %0, %1, %cst {dimension_numbers = #tpu.dot_dimension_numbers<[1], [0], [0], [1], [0, 0, 1, 1], [], []>} : vector<8x16xf32>, vector<16x32xf32>, vector<8x32xf32> -> vector<8x32xf32>
    %c0_3 = arith.constant 0 : index
    %c0_4 = arith.constant 0 : index
    %3 = vector.load %arg3[%c0_3, %c0_4] : memref<1x32xf32, #tpu.memory_space<vmem>>, vector<1x32xf32>
    %4 = vector.broadcast %3 : vector<1x32xf32> to vector<8x32xf32>
    %5 = arith.addf %2, %4 : vector<8x32xf32>
    %cst_5 = arith.constant 0.000000e+00 : f32
    %6 = vector.broadcast %cst_5 : f32 to vector<8x32xf32>
    %7 = arith.maximumf %5, %6 : vector<8x32xf32>
    %c0_6 = arith.constant 0 : index
    %c0_7 = arith.constant 0 : index
    %8 = vector.load %arg4[%c0_6, %c0_7] : memref<32x8xf32, #tpu.memory_space<vmem>>, vector<32x8xf32>
    %cst_8 = arith.constant dense<0.000000e+00> : vector<8x8xf32>
    %9 = tpu.matmul %7, %8, %cst_8 {dimension_numbers = #tpu.dot_dimension_numbers<[1], [0], [0], [1], [0, 0, 1, 1], [], []>} : vector<8x32xf32>, vector<32x8xf32>, vector<8x8xf32> -> vector<8x8xf32>
    %c0_9 = arith.constant 0 : index
    %c0_10 = arith.constant 0 : index
    %10 = vector.load %arg5[%c0_9, %c0_10] : memref<1x8xf32, #tpu.memory_space<vmem>>, vector<1x8xf32>
    %11 = vector.broadcast %10 : vector<1x8xf32> to vector<8x8xf32>
    %12 = arith.addf %9, %11 : vector<8x8xf32>
    %c0_11 = arith.constant 0 : index
    %c0_12 = arith.constant 0 : index
    %13 = vector.load %arg6[%c0_11, %c0_12] : memref<32x8xf32, #tpu.memory_space<vmem>>, vector<32x8xf32>
    %cst_13 = arith.constant dense<0.000000e+00> : vector<8x8xf32>
    %14 = tpu.matmul %7, %13, %cst_13 {dimension_numbers = #tpu.dot_dimension_numbers<[1], [0], [0], [1], [0, 0, 1, 1], [], []>} : vector<8x32xf32>, vector<32x8xf32>, vector<8x8xf32> -> vector<8x8xf32>
    %c0_14 = arith.constant 0 : index
    %c0_15 = arith.constant 0 : index
    %15 = vector.load %arg7[%c0_14, %c0_15] : memref<1x8xf32, #tpu.memory_space<vmem>>, vector<1x8xf32>
    %16 = vector.broadcast %15 : vector<1x8xf32> to vector<8x8xf32>
    %17 = arith.addf %14, %16 : vector<8x8xf32>
    %cst_16 = arith.constant 5.000000e-01 : f32
    %18 = vector.broadcast %cst_16 : f32 to vector<8x8xf32>
    %19 = arith.mulf %18, %12 : vector<8x8xf32>
    %20 = math.exp %19 : vector<8x8xf32>
    %c0_17 = arith.constant 0 : index
    %c0_18 = arith.constant 0 : index
    %21 = vector.load %arg8[%c0_17, %c0_18] : memref<8x8xf32, #tpu.memory_space<vmem>>, vector<8x8xf32>
    %22 = arith.mulf %20, %21 : vector<8x8xf32>
    %23 = arith.addf %22, %17 : vector<8x8xf32>
    %c0_19 = arith.constant 0 : index
    %c0_20 = arith.constant 0 : index
    %24 = vector.load %arg9[%c0_19, %c0_20] : memref<8x8xf32, #tpu.memory_space<vmem>>, vector<8x8xf32>
    tpu.vector_store %arg9[%c0_19, %c0_20], %23 {strides = array<i32>} : memref<8x8xf32, #tpu.memory_space<vmem>>, vector<8x8xf32>,
    %c0_21 = arith.constant 0 : index
    %c0_22 = arith.constant 0 : index
    %25 = vector.load %arg10[%c0_21, %c0_22] : memref<8x8xf32, #tpu.memory_space<vmem>>, vector<8x8xf32>
    tpu.vector_store %arg10[%c0_21, %c0_22], %12 {strides = array<i32>} : memref<8x8xf32, #tpu.memory_space<vmem>>, vector<8x8xf32>,
    %c0_23 = arith.constant 0 : index
    %c0_24 = arith.constant 0 : index
    %26 = vector.load %arg11[%c0_23, %c0_24] : memref<8x8xf32, #tpu.memory_space<vmem>>, vector<8x8xf32>
    tpu.vector_store %arg11[%c0_23, %c0_24], %17 {strides = array<i32>} : memref<8x8xf32, #tpu.memory_space<vmem>>, vector<8x8xf32>,
    return
  }
  func.func @transform_0(%arg0: i32) -> (i32, i32) {
    %c0_i32 = arith.constant 0 : i32
    %c0_i32_0 = arith.constant 0 : i32
    return %arg0, %c0_i32 : i32, i32
  }
  func.func @transform_1(%arg0: i32) -> (i32, i32) {
    %c0_i32 = arith.constant 0 : i32
    %c0_i32_0 = arith.constant 0 : i32
    %c0_i32_1 = arith.constant 0 : i32
    return %c0_i32, %c0_i32_0 : i32, i32
  }
  func.func @transform_2(%arg0: i32) -> (i32, i32) {
    %c0_i32 = arith.constant 0 : i32
    %c0_i32_0 = arith.constant 0 : i32
    %c0_i32_1 = arith.constant 0 : i32
    return %c0_i32, %c0_i32_0 : i32, i32
  }
  func.func @transform_3(%arg0: i32) -> (i32, i32) {
    %c0_i32 = arith.constant 0 : i32
    %c0_i32_0 = arith.constant 0 : i32
    %c0_i32_1 = arith.constant 0 : i32
    return %c0_i32, %c0_i32_0 : i32, i32
  }
  func.func @transform_4(%arg0: i32) -> (i32, i32) {
    %c0_i32 = arith.constant 0 : i32
    %c0_i32_0 = arith.constant 0 : i32
    %c0_i32_1 = arith.constant 0 : i32
    return %c0_i32, %c0_i32_0 : i32, i32
  }
  func.func @transform_5(%arg0: i32) -> (i32, i32) {
    %c0_i32 = arith.constant 0 : i32
    %c0_i32_0 = arith.constant 0 : i32
    %c0_i32_1 = arith.constant 0 : i32
    return %c0_i32, %c0_i32_0 : i32, i32
  }
  func.func @transform_6(%arg0: i32) -> (i32, i32) {
    %c0_i32 = arith.constant 0 : i32
    %c0_i32_0 = arith.constant 0 : i32
    %c0_i32_1 = arith.constant 0 : i32
    return %c0_i32, %c0_i32_0 : i32, i32
  }
  func.func @transform_7(%arg0: i32) -> (i32, i32) {
    %c0_i32 = arith.constant 0 : i32
    %c0_i32_0 = arith.constant 0 : i32
    return %arg0, %c0_i32 : i32, i32
  }
  func.func @transform_8(%arg0: i32) -> (i32, i32) {
    %c0_i32 = arith.constant 0 : i32
    %c0_i32_0 = arith.constant 0 : i32
    return %arg0, %c0_i32 : i32, i32
  }
  func.func @transform_9(%arg0: i32) -> (i32, i32) {
    %c0_i32 = arith.constant 0 : i32
    %c0_i32_0 = arith.constant 0 : i32
    return %arg0, %c0_i32 : i32, i32
  }
  func.func @transform_10(%arg0: i32) -> (i32, i32) {
    %c0_i32 = arith.constant 0 : i32
    %c0_i32_0 = arith.constant 0 : i32
    return %arg0, %c0_i32 : i32, i32
  }
}

</mosaic_0001>

<bundles_post_ra>
// kernel: tpu_custom_call.1
= control target key start
LH: loop header
LB: loop body
LE: loop exit
PB: predicated region body
PF: predicated region fallthrough
CT: control target
= control target key end

     0   :  { %16 = vsyncpa [#allocation3], 0  ;;  %v477_v2 = vmov 0.0|0.0   ;;  %vm478_vm0 = vmmov 0   ;;  %v479_v4 = vmov 0.0   ;;  %s632_s0 = inlined_call_operand.vmem [shape: f32[8,16], index: 0, kind: input, shape index: {}]   ;;  %s633_s1 = inlined_call_operand.vmem [shape: f32[16,32], index: 1, kind: input, shape index: {}]   ;;  %s634_s2 = inlined_call_operand.vmem [shape: f32[1,32], index: 2, kind: input, shape index: {}]   ;;  %s635_s3 = inlined_call_operand.vmem [shape: f32[32,8], index: 3, kind: input, shape index: {}]   ;;  %s636_s4 = inlined_call_operand.vmem [shape: f32[1,8], index: 4, kind: input, shape index: {}]   ;;  %s637_s5 = inlined_call_operand.vmem [shape: f32[32,8], index: 5, kind: input, shape index: {}]   ;;  %s638_s6 = inlined_call_operand.vmem [shape: f32[1,8], index: 6, kind: input, shape index: {}]   ;;  %s639_s7 = inlined_call_operand.vmem [shape: f32[8,8], index: 7, kind: input, shape index: {}]   ;;  %s640_s8 = inlined_call_operand.hbm [shape: f32[8,8], index: 8, kind: output, shape index: {0}]   ;;  %s641_s9 = inlined_call_operand.hbm [shape: f32[8,8], index: 9, kind: output, shape index: {1}]   ;;  %s642_s10 = inlined_call_operand.hbm [shape: f32[8,8], index: 10, kind: output, shape index: {2}]  }
   0x1   :  { %v35_v0 = vld [vmem:[%s633_s1] sm:$0xff]  ;;  %v36_v1 = vld [vmem:[%s633_s1 + $0x8] sm:$0xff]  ;;  %384 = vmatprep.subr.bf16.mxu0 %v477_v2  ;;  %359 = vmatprep.mubr.msk.f32.mxu0 %vm478_vm0, %v479_v4 }
   0x2   :  { %v385_v3 = vpack.c.bf16 %v36_v1, %v35_v0  ;;  %v119_v5 = vld [vmem:[%s635_s3] sm:$0xff]  ;;  %v120_v6 = vld [vmem:[%s635_s3 + $0x8] sm:$0xff]  ;;  %387 = vmatprep.subr.bf16.mxu1 %v477_v2  ;;  %370 = vmatprep.mubr.msk.f32.mxu1 %vm478_vm0, %v479_v4 }
   0x3   :  { %v204_v7 = vld [vmem:[%s637_s5] sm:$0xff]  ;;  %v388_v8 = vpack.c.bf16 %v120_v6, %v119_v5  ;;  %v205_v9 = vld [vmem:[%s637_s5 + $0x8] sm:$0xff] }
   0x4   :  { %17 = vsyncpa [#allocation5], 0  ;;  %386 = vmatpush3.bf16.msra.mxu0 %v385_v3  ;;  %v34_v10 = vld [vmem:[%s632_s0] sm:$0xff]  ;;  %vm44_vm1 = vcmask 130048   ;;  %v394_v11 = vpack.c.bf16 %v205_v9, %v204_v7  ;;  %v121_v12 = vld [vmem:[%s635_s3 + $0x10] sm:$0xff]  ;;  %vm130_vm2 = vcmask 261120  }
   0x5   :  { %393 = vmatprep.subr.bf16.mxu0 %v477_v2  ;;  %389 = vmatpush3.bf16.msra.mxu1 %v388_v8  ;;  %v122_v13 = vld [vmem:[%s635_s3 + $0x18] sm:$0xff]  ;;  %v206_v14 = vld [vmem:[%s637_s5 + $0x10] sm:$0xff]  ;;  %v336_v18 = vld [vmem:[%s634_s2] ss:$0 sm:$0xff]  ;;  %s480_s17 = smov [#allocation4]   ;;  %s481_s19 = smov [#allocation6]  }
   0x6   :  { %390 = vmatprep.subr.bf16.mxu1 %v477_v2  ;;  %v391_v15 = vpack.c.bf16 %v122_v13, %v121_v12  ;;  %v207_v16 = vld [vmem:[%s637_s5 + $0x18] sm:$0xff]  ;;  %v338_v23 = vld [vmem:[%s636_s4] ss:$0 sm:$0xff]  ;;  %s311_s18 = sshll.u32 %s480_s17, 4  ;;  %s321_s20 = sshll.u32 %s481_s19, 4  ;;  %vm291_vm3 = vcmask 64512   ;;  %s312_s18 = int_to_ptr.vmem [resolvable:$true] %s311_s18  ;;  %s583_s20 = int_to_ptr.vmem [resolvable:$true] %s321_s20 }
   0x7   :  { %360 = vmatmul.mubr.msk.f32.vlgmr.msra.gmra.mrb[0].mxu0 %vm44_vm1, %v34_v10  ;;  %v397_v17 = vpack.c.bf16 %v207_v16, %v206_v14  ;;  %v340_v24 = vld [vmem:[%s638_s6] ss:$0 sm:$0xff]  ;;  %s407_s2 = scalar_lea.vmem %s312_s18, 128  ;;  %p412_p1 = scmp.lt.s32.totalorder %s312_s18, %s312_s18 }
   0x8   :  { %395 = vmatpush3.bf16.msra.mxu0 %v394_v11  ;;  %381 = vmatprep.mubr.msk.f32.mxu0 %vm478_vm0, %v479_v4  ;;  %p408_p0 = scmp.ne.s32.totalorder %s312_s18, %s407_s2  ;;  %p413_p2 = scmp.lt.s32.totalorder %s407_s2, %s407_s2 }
   0x9   :  { %396 = vmatprep.subr.bf16.mxu0 %v477_v2  ;;  %392 = vmatpush3.bf16.msra.mxu1 %v391_v15 }
   0xa   :  { %p414_p3 = por %p413_p2, %p412_p1 }
   0xc   :  { %398 = vmatpush3.bf16.msra.mxu0 %v397_v17  ;;  %p415_p4 = pnand %p414_p3, %p408_p0 }
  0xda   :  { %v114_v19 = vpop.f32.mrb[0].mxu0 }
  0xdb   :  { %v115_v20 = vadd.f32 %v336_v18, %v114_v19  ;;  %v361_v21 = vpop.f32.mrb[1].mxu0 }
  0xdd   :  { %v118_v22 = vmax.f32 %v115_v20, 0.0 }
  0xdf   :  { %371 = vmatmul.mubr.msk.f32.vlgmr.msra.gmra.mrb[0].mxu1 %vm130_vm2, %v118_v22  ;;  %382 = vmatmul.mubr.msk.f32.vlgmr.msra.gmra.mrb[2].mxu0 %vm130_vm2, %v118_v22 }
 0x1b2   :  { %v200_v25 = vpop.f32.mrb[0].mxu1  ;;  %v281_v26 = vpop.f32.mrb[2].mxu0 }
 0x1b3   :  { %v201_v27 = vadd.f32 %v338_v23, %v200_v25  ;;  %v282_v28 = vadd.f32 %v340_v24, %v281_v26  ;;  %v372_v29 = vpop.f32.mrb[1].mxu1  ;;  %v383_v30 = vpop.f32.mrb[3].mxu0 }
 0x1b5   :  { %v285_v31 = vmul.f32 0.5, %v201_v27  ;;  %293 = vst.msk [vmem:[#allocation4] sm:$0xff] %vm291_vm3, %v201_v27  ;;  %294 = vst.msk [vmem:[#allocation6] sm:$0xff] %vm291_vm3, %v282_v28 }
 0x1b6   :  { %418 = shalt.err (!%p415_p4)
}
 0x1b7   :  { %s419_s21 = scalar_lea.hbm %s641_s9, 128 }
 0x1b8   :  { %p420_p5 = scmp.ne.s32.totalorder %s641_s9, %s419_s21  ;;  %p423_p6 = scmp.lt.u32.totalorder %s419_s21, %s641_s9 }
 0x1ba   :  { %p425_p7 = pnand %p423_p6, %p420_p5 }
 0x1bc   :  { %428 = shalt.err (!%p425_p7)
}
 0x1bd   :  { %314 = dma.vmem_to_hbm [thread:$0]  %s312_s18, 128, %s641_s9, [#allocation5]   ;;  %v286_v32 = vmul.f32 1.442695, %v285_v31 }
 0x1be   :  { %s429_s27 = scalar_lea.vmem %s583_s20, 128  ;;  %p434_p9 = scmp.lt.s32.totalorder %s583_s20, %s583_s20 }
 0x1bf   :  { %p430_p8 = scmp.ne.s32.totalorder %s583_s20, %s429_s27  ;;  %p435_p10 = scmp.lt.s32.totalorder %s429_s27, %s429_s27 }
 0x1c1   :  { %p436_p11 = por %p435_p10, %p434_p9 }
 0x1c3   :  { %p437_p12 = pnand %p436_p11, %p430_p8 }
 0x1c5   :  { %440 = shalt.err (!%p437_p12)
}
 0x1c6   :  { %s441_s30 = scalar_lea.hbm %s642_s10, 128 }
 0x1c7   :  { %p442_p13 = scmp.ne.s32.totalorder %s642_s10, %s441_s30  ;;  %p445_p0 = scmp.lt.u32.totalorder %s441_s30, %s642_s10 }
 0x1c9   :  { %p447_p1 = pnand %p445_p0, %p442_p13 }
 0x1cb   :  { %450 = shalt.err (!%p447_p1)
}
 0x1cc   :  { %324 = dma.vmem_to_hbm [thread:$0]  %s583_s20, 128, %s642_s10, [#allocation5]   ;;  %405 = vpow2.f32 %v286_v32  ;;  %v288_v33 = vld [vmem:[%s639_s7] sm:$0xff] }
 0x1cd   :  { %s482_s16 = smov [#allocation2]  }
 0x1ce   :  { %s301_s5 = sshll.u32 %s482_s16, 4  ;;  %s302_s5 = int_to_ptr.vmem [resolvable:$true] %s301_s5 }
 0x1cf   :  { %s451_s17 = scalar_lea.vmem %s302_s5, 128  ;;  %p456_p3 = scmp.lt.s32.totalorder %s302_s5, %s302_s5 }
 0x1d0   :  { %p452_p2 = scmp.ne.s32.totalorder %s302_s5, %s451_s17  ;;  %p457_p4 = scmp.lt.s32.totalorder %s451_s17, %s451_s17 }
 0x1d2   :  { %p458_p5 = por %p457_p4, %p456_p3 }
 0x1d4   :  { %p459_p6 = pnand %p458_p5, %p452_p2 }
 0x1d6   :  { %v406_v34 = vpop.eup %405 }
 0x1d7   :  { %v289_v35 = vmul.f32 %v406_v34, %v288_v33 }
 0x1d9   :  { %v290_v36 = vadd.f32 %v289_v35, %v282_v28 }
 0x1db   :  { %292 = vst.msk [vmem:[#allocation2] sm:$0xff] %vm291_vm3, %v290_v36 }
 0x1dc   :  { %462 = shalt.err (!%p459_p6)
}
 0x1dd   :  { %s463_s19 = scalar_lea.hbm %s640_s8, 128 }
 0x1de   :  { %p464_p7 = scmp.ne.s32.totalorder %s640_s8, %s463_s19  ;;  %p467_p8 = scmp.lt.u32.totalorder %s463_s19, %s640_s8 }
 0x1e0   :  { %p469_p9 = pnand %p467_p8, %p464_p7 }
 0x1e2   :  { %472 = shalt.err (!%p469_p9)
}
 0x1e3   :  { %304 = dma.vmem_to_hbm [thread:$0]  %s302_s5, 128, %s640_s8, [#allocation3]  }
 0x1e4   :  { %473 = dma.done.wait [#allocation3], 128  }
 0x1e5   :  { %474 = vsyncadd [#allocation3], 4294967168 }
 0x1e6   :  { %475 = dma.done.wait [#allocation5], 256  }
 0x1e7   :  { %476 = vsyncadd [#allocation5], 4294967040 }
 0x1e8   :  { %334 = vsyncpa [#allocation3], 1 }
 0x1e9   :  { %335 = vsyncpa [#allocation5], 1 }

</bundles_post_ra>
